<compile_context>
chip_gen: v5e
topology: v5e:2x2
jax: 0.10.0
libtpu: 0.0.40
codegen_flags: <defaults>
</compile_context>

<pallas_src>
import functools

import jax
import jax.numpy as jnp
from jax.experimental import pallas as pl
from jax.experimental.pallas import tpu as pltpu


def _round_up(x, m):
    return ((x + m - 1) // m) * m


def _chip_config():
    """Per-generation (batch-tile target, vmem_limit_bytes).

    Lane-padded VMEM footprint per batch row (f32 minor dims pad to 128 lanes):
        x input pipeline   : 2 buffers x 512 B = 1.0 KiB
        output pipeline    : 2 buffers x 512 B = 1.0 KiB  (a [block_b, 10] f32 block
                                                           still spans one lane tile)
        live temporaries   : ~2-3 KiB (h, logits, shifted/exp, row stats; with reuse)
      -> ~4-5 KiB/row worst case: block_b=4096 ~ 16-20 MiB, 8192 ~ 32-40 MiB.
    Weights/biases total <0.1 MiB and stay resident.

      v7x : only 64 MiB physical VMEM/TC -> block_b 4096 (~16-20 MiB), limit 48 MiB.
      v6e : 128 MiB physical, ~1.4 TB/s HBM -> block_b 8192, limit 64 MiB.
      v5e : 128 MiB physical but ~0.8 TB/s HBM: a 4096-row tile is already ~0.8 us of
            DMA vs the ~0.35 us per-step cost, so bigger tiles buy little -> 4096.
    """
    try:
        kind = jax.devices()[0].device_kind.lower()
    except Exception:
        kind = ""
    if "v7" in kind:
        return 4096, 48 * 1024 * 1024
    if "v6" in kind:
        return 8192, 64 * 1024 * 1024
    return 4096, 48 * 1024 * 1024


def _choose_block_b(B, target):
    """8-aligned batch tile: big enough to amortize the ~0.35 us per-grid-step cost,
    bounded by the per-chip VMEM budget (target), and capped so the grid keeps >=4
    steps when the batch allows it (lets dimension_semantics=("parallel",) shard
    across v7x's two TensorCores while preserving read/write DMA overlap)."""
    bb = min(target, _round_up(B, 8))
    if B > 4 * 8:
        bb = min(bb, max(8, _round_up(pl.cdiv(B, 4), 8)))
    return max(8, bb)


def _nn_logsoftmax_kernel(x_ref, w1_ref, b1_ref, w2_ref, b2_ref, out_ref, *,
                          num_classes):
    # One batch tile per grid step; params resident in VMEM.
    # bf16 MXU inputs, f32 accumulation (preferred_element_type).
    x = x_ref[...].astype(jnp.bfloat16)

    # fc1 + ReLU (f32 accumulate, f32 bias/ReLU).
    h = jnp.dot(x, w1_ref[...], preferred_element_type=jnp.float32) + b1_ref[...]
    h = jnp.maximum(h, 0.0)

    # fc2 -- rhs stays padded to a lane-dense 128-wide class dim (MXU-friendly).
    logits = jnp.dot(h.astype(jnp.bfloat16), w2_ref[...],
                     preferred_element_type=jnp.float32) + b2_ref[...]

    # Mask padded class columns to -inf BEFORE max / exp-sum so they contribute
    # exp(-inf)=0 to the normalizer (there is always >=1 valid class per row).
    c_pad = logits.shape[-1]
    col = jax.lax.broadcasted_iota(jnp.int32, (1, c_pad), 1)
    valid = col < num_classes
    logits = jnp.where(valid, logits, -jnp.inf)

    # Numerically-stable log_softmax along the class (last) axis.  f32 exp/log.
    m = jnp.max(logits, axis=-1, keepdims=True)
    shifted = logits - m
    lse = jnp.log(jnp.sum(jnp.exp(shifted), axis=-1, keepdims=True))
    logp = shifted - lse

    # Store only the real classes: narrow [block_b, C] writeback (40 B/row) instead
    # of the padded 128-lane slab; padded (-inf) columns are never written.
    out_ref[...] = logp[:, :num_classes].astype(out_ref.dtype)


def prepare_params(w1, b1, w2, b2):
    """One-time parameter prep (bf16 casts, lane padding, bias reshapes).

    Hoisted out of the call path so it is not re-done (and re-DMA'd) per invocation.
    w1: [D, H]; b1: [H]; w2: [H, C]; b2: [C].
    """
    H = w1.shape[1]
    C = w2.shape[1]
    C_pad = max(128, _round_up(C, 128))           # lane-dense fc2 matmul width
    w1_bf = w1.astype(jnp.bfloat16)
    w2_bf = jnp.zeros((H, C_pad), jnp.bfloat16).at[:, :C].set(w2.astype(jnp.bfloat16))
    b1_2d = b1.reshape(1, H).astype(jnp.float32)
    b2_2d = jnp.zeros((1, C_pad), jnp.float32).at[:, :C].set(b2.astype(jnp.float32))
    return (w1_bf, b1_2d, w2_bf, b2_2d, C)


def nn_logsoftmax_prepared(x, prepared, *, block_b=None, vmem_limit_bytes=None):
    """x: [B, D] f32; prepared = prepare_params(...) -> [B, C] f32 log-probs."""
    w1_bf, b1_2d, w2_bf, b2_2d, C = prepared
    B, D = x.shape
    H = w1_bf.shape[1]
    C_pad = w2_bf.shape[1]

    target_bb, target_vmem = _chip_config()
    if block_b is None:
        block_b = _choose_block_b(B, target_bb)
    if vmem_limit_bytes is None:
        vmem_limit_bytes = target_vmem

    grid = (pl.cdiv(B, block_b),)

    return pl.pallas_call(
        functools.partial(_nn_logsoftmax_kernel, num_classes=C),
        out_shape=jax.ShapeDtypeStruct((B, C), jnp.float32),
        grid_spec=pl.GridSpec(
            grid=grid,
            in_specs=[
                pl.BlockSpec((block_b, D), lambda i: (i, 0)),   # x tile
                pl.BlockSpec((D, H), lambda i: (0, 0)),         # w1 (resident, bf16)
                pl.BlockSpec((1, H), lambda i: (0, 0)),         # b1
                pl.BlockSpec((H, C_pad), lambda i: (0, 0)),     # w2 (resident, padded)
                pl.BlockSpec((1, C_pad), lambda i: (0, 0)),     # b2 (padded)
            ],
            # Narrow output block: spans the full class dim (C), so the writeback
            # DMA stays contiguous while HBM traffic drops ~7x vs the padded slab.
            out_specs=pl.BlockSpec((block_b, C), lambda i: (i, 0)),
        ),
        compiler_params=pltpu.CompilerParams(
            dimension_semantics=("parallel",),
            vmem_limit_bytes=vmem_limit_bytes,
        ),
    )(x, w1_bf, b1_2d, w2_bf, b2_2d)


def nn_logsoftmax(x, w1, b1, w2, b2, *, block_b=None):
    """Convenience wrapper that preps params per call (prefer prepare_params + 
    nn_logsoftmax_prepared in a real loop)."""
    return nn_logsoftmax_prepared(x, prepare_params(w1, b1, w2, b2), block_b=block_b)


def init_params(key, d, layer_size, num_classes):
    """Deterministic init mimicking PyTorch nn.Linear default
    (U[-1/sqrt(fan_in), 1/sqrt(fan_in)]).  Stored as [in, out]."""
    k1, k2, k3, k4 = jax.random.split(key, 4)
    bound1 = 1.0 / (d ** 0.5)
    bound2 = 1.0 / (layer_size ** 0.5)
    w1 = jax.random.uniform(k1, (d, layer_size), jnp.float32, -bound1, bound1)
    b1 = jax.random.uniform(k2, (layer_size,), jnp.float32, -bound1, bound1)
    w2 = jax.random.uniform(k3, (layer_size, num_classes), jnp.float32, -bound2, bound2)
    b2 = jax.random.uniform(k4, (num_classes,), jnp.float32, -bound2, bound2)
    return w1, b1, w2, b2


if __name__ == "__main__":
    # Small shapes consistent with the module: batch=8, d=32, layer_size=64, num_classes=10.
    # NOTE: at B=8 this is pure launch/step overhead -- the tile-size machinery only
    # matters at realistic batch sizes (thousands+); do not tune against B=8 timings.
    B, D, H, C = 8, 32, 64, 10
    key = jax.random.PRNGKey(0)
    kx, kp = jax.random.split(key)
    x = jax.random.normal(kx, (B, D), jnp.float32)
    w1, b1, w2, b2 = init_params(kp, D, H, C)

    params = prepare_params(w1, b1, w2, b2)       # one-time param prep
    out = nn_logsoftmax_prepared(x, params)
    out = jax.block_until_ready(out)
    assert out.shape == (B, C)
    assert bool(jnp.all(jnp.isfinite(out))), "non-finite log-probs"

    # Tight check against a reference using the same bf16 MXU inputs / f32 accumulation.
    h_bf = jnp.maximum(
        jnp.dot(x.astype(jnp.bfloat16), w1.astype(jnp.bfloat16),
                preferred_element_type=jnp.float32) + b1, 0.0)
    logits_bf = jnp.dot(h_bf.astype(jnp.bfloat16), w2.astype(jnp.bfloat16),
                        preferred_element_type=jnp.float32) + b2
    ref_bf = jax.nn.log_softmax(logits_bf, axis=1)
    assert jnp.allclose(out, ref_bf, atol=2e-3, rtol=1e-3), "mismatch vs bf16-matmul reference"

    # Loose check against the full-f32 reference (forward-pass semantics preserved).
    h_ref = jnp.maximum(x @ w1 + b1, 0.0)
    logits_ref = h_ref @ w2 + b2
    ref = jax.nn.log_softmax(logits_ref, axis=1)
    assert jnp.allclose(out, ref, atol=5e-2, rtol=1e-2), "mismatch vs f32 reference"

    print("KERNEL_OK")
</pallas_src>

<mosaic_0001>
module attributes {stable_mosaic.version = 11 : i64} {
  func.func @_nn_logsoftmax_kernel(%arg0: i32, %arg1: memref<8x32xf32, #tpu.memory_space<vmem>>, %arg2: memref<32x64xbf16, #tpu.memory_space<vmem>>, %arg3: memref<1x64xf32, #tpu.memory_space<vmem>>, %arg4: memref<64x128xbf16, #tpu.memory_space<vmem>>, %arg5: memref<1x128xf32, #tpu.memory_space<vmem>>, %arg6: memref<8x10xf32, #tpu.memory_space<vmem>>) attributes {dimension_semantics = [#tpu.dimension_semantics<parallel>], iteration_bounds = array<i64: 1>, scalar_prefetch = 0 : i64, scratch_operands = 0 : i64, tpu.core_type = #tpu.core_type<tc>, window_params = [{transform_indices = @transform_0, window_bounds = array<i64: 8, 32>}, {pipeline_mode = #tpu.pipeline_mode<synchronous>, transform_indices = @transform_1, window_bounds = array<i64: 32, 64>}, {pipeline_mode = #tpu.pipeline_mode<synchronous>, transform_indices = @transform_2, window_bounds = array<i64: 1, 64>}, {pipeline_mode = #tpu.pipeline_mode<synchronous>, transform_indices = @transform_3, window_bounds = array<i64: 64, 128>}, {pipeline_mode = #tpu.pipeline_mode<synchronous>, transform_indices = @transform_4, window_bounds = array<i64: 1, 128>}, {transform_indices = @transform_5, window_bounds = array<i64: 8, 10>}]} {
    %c0 = arith.constant 0 : index
    %c0_0 = arith.constant 0 : index
    %0 = vector.load %arg1[%c0, %c0_0] : memref<8x32xf32, #tpu.memory_space<vmem>>, vector<8x32xf32>
    %1 = arith.truncf %0 : vector<8x32xf32> to vector<8x32xbf16>
    %c0_1 = arith.constant 0 : index
    %c0_2 = arith.constant 0 : index
    %2 = vector.load %arg2[%c0_1, %c0_2] : memref<32x64xbf16, #tpu.memory_space<vmem>>, vector<32x64xbf16>
    %cst = arith.constant dense<0.000000e+00> : vector<8x64xf32>
    %3 = tpu.matmul %1, %2, %cst {dimension_numbers = #tpu.dot_dimension_numbers<[1], [0], [0], [1], [0, 0, 1, 1], [], []>} : vector<8x32xbf16>, vector<32x64xbf16>, vector<8x64xf32> -> vector<8x64xf32>
    %c0_3 = arith.constant 0 : index
    %c0_4 = arith.constant 0 : index
    %4 = vector.load %arg3[%c0_3, %c0_4] : memref<1x64xf32, #tpu.memory_space<vmem>>, vector<1x64xf32>
    %5 = vector.broadcast %4 : vector<1x64xf32> to vector<8x64xf32>
    %6 = arith.addf %3, %5 : vector<8x64xf32>
    %cst_5 = arith.constant 0.000000e+00 : f32
    %7 = vector.broadcast %cst_5 : f32 to vector<8x64xf32>
    %8 = arith.maximumf %6, %7 : vector<8x64xf32>
    %9 = arith.truncf %8 : vector<8x64xf32> to vector<8x64xbf16>
    %c0_6 = arith.constant 0 : index
    %c0_7 = arith.constant 0 : index
    %10 = vector.load %arg4[%c0_6, %c0_7] : memref<64x128xbf16, #tpu.memory_space<vmem>>, vector<64x128xbf16>
    %cst_8 = arith.constant dense<0.000000e+00> : vector<8x128xf32>
    %11 = tpu.matmul %9, %10, %cst_8 {dimension_numbers = #tpu.dot_dimension_numbers<[1], [0], [0], [1], [0, 0, 1, 1], [], []>} : vector<8x64xbf16>, vector<64x128xbf16>, vector<8x128xf32> -> vector<8x128xf32>
    %c0_9 = arith.constant 0 : index
    %c0_10 = arith.constant 0 : index
    %12 = vector.load %arg5[%c0_9, %c0_10] : memref<1x128xf32, #tpu.memory_space<vmem>>, vector<1x128xf32>
    %13 = vector.broadcast %12 : vector<1x128xf32> to vector<8x128xf32>
    %14 = arith.addf %11, %13 : vector<8x128xf32>
    %15 = tpu.iota {dimensions = array<i32: 1>} : vector<1x128xi32>
    %c10_i32 = arith.constant 10 : i32
    %16 = vector.broadcast %c10_i32 : i32 to vector<1x128xi32>
    %17 = arith.cmpi slt, %15, %16 : vector<1x128xi32>
    %cst_11 = arith.constant 0xFF800000 : f32
    %18 = vector.shape_cast %17 : vector<1x128xi1> to vector<1x128xi1>
    %19 = vector.broadcast %18 : vector<1x128xi1> to vector<8x128xi1>
    %20 = vector.broadcast %cst_11 : f32 to vector<8x128xf32>
    %21 = arith.select %19, %14, %20 : vector<8x128xi1>, vector<8x128xf32>
    %cst_12 = arith.constant dense<0xFF800000> : vector<8xf32>
    %22 = vector.multi_reduction <maximumf>, %21, %cst_12 [1] : vector<8x128xf32> to vector<8xf32>
    %23 = vector.shape_cast %22 : vector<8xf32> to vector<8x1xf32>
    %24 = vector.broadcast %23 : vector<8x1xf32> to vector<8x128xf32>
    %25 = arith.subf %21, %24 : vector<8x128xf32>
    %26 = math.exp %25 : vector<8x128xf32>
    %cst_13 = arith.constant dense<0.000000e+00> : vector<8xf32>
    %27 = vector.multi_reduction <add>, %26, %cst_13 [1] : vector<8x128xf32> to vector<8xf32>
    %28 = vector.shape_cast %27 : vector<8xf32> to vector<8x1xf32>
    %29 = math.log %28 : vector<8x1xf32>
    %30 = vector.broadcast %29 : vector<8x1xf32> to vector<8x128xf32>
    %31 = arith.subf %25, %30 : vector<8x128xf32>
    %32 = vector.extract_strided_slice %31 {offsets = [0, 0], sizes = [8, 10], strides = [1, 1]} : vector<8x128xf32> to vector<8x10xf32>
    %c0_14 = arith.constant 0 : index
    %c0_15 = arith.constant 0 : index
    %33 = vector.load %arg6[%c0_14, %c0_15] : memref<8x10xf32, #tpu.memory_space<vmem>>, vector<8x10xf32>
    tpu.vector_store %arg6[%c0_14, %c0_15], %32 {strides = array<i32>} : memref<8x10xf32, #tpu.memory_space<vmem>>, vector<8x10xf32>,
    return
  }
  func.func @transform_0(%arg0: i32) -> (i32, i32) {
    %c0_i32 = arith.constant 0 : i32
    %c0_i32_0 = arith.constant 0 : i32
    return %arg0, %c0_i32 : i32, i32
  }
  func.func @transform_1(%arg0: i32) -> (i32, i32) {
    %c0_i32 = arith.constant 0 : i32
    %c0_i32_0 = arith.constant 0 : i32
    %c0_i32_1 = arith.constant 0 : i32
    return %c0_i32, %c0_i32_0 : i32, i32
  }
  func.func @transform_2(%arg0: i32) -> (i32, i32) {
    %c0_i32 = arith.constant 0 : i32
    %c0_i32_0 = arith.constant 0 : i32
    %c0_i32_1 = arith.constant 0 : i32
    return %c0_i32, %c0_i32_0 : i32, i32
  }
  func.func @transform_3(%arg0: i32) -> (i32, i32) {
    %c0_i32 = arith.constant 0 : i32
    %c0_i32_0 = arith.constant 0 : i32
    %c0_i32_1 = arith.constant 0 : i32
    return %c0_i32, %c0_i32_0 : i32, i32
  }
  func.func @transform_4(%arg0: i32) -> (i32, i32) {
    %c0_i32 = arith.constant 0 : i32
    %c0_i32_0 = arith.constant 0 : i32
    %c0_i32_1 = arith.constant 0 : i32
    return %c0_i32, %c0_i32_0 : i32, i32
  }
  func.func @transform_5(%arg0: i32) -> (i32, i32) {
    %c0_i32 = arith.constant 0 : i32
    %c0_i32_0 = arith.constant 0 : i32
    return %arg0, %c0_i32 : i32, i32
  }
}

</mosaic_0001>

<bundles_post_ra>
// kernel: tpu_custom_call.1
= control target key start
LH: loop header
LB: loop body
LE: loop exit
PB: predicated region body
PF: predicated region fallthrough
CT: control target
= control target key end

     0   :  { %10 = vsyncpa [#allocation3], 0  ;;  %s397_s0 = inlined_call_operand.hbm [shape: f32[8,32], index: 0, kind: input, shape index: {}]   ;;  %s398_s1 = inlined_call_operand.hbm [shape: bf16[32,64], index: 1, kind: input, shape index: {}]   ;;  %s399_s2 = inlined_call_operand.vmem [shape: f32[1,64], index: 2, kind: input, shape index: {}]   ;;  %s400_s3 = inlined_call_operand.hbm [shape: bf16[64,128], index: 3, kind: input, shape index: {}]   ;;  %s401_s4 = inlined_call_operand.vmem [shape: f32[1,128], index: 4, kind: input, shape index: {}]   ;;  %s402_s5 = inlined_call_operand.hbm [shape: f32[8,10], index: 5, kind: output, shape index: {}]  }
   0x1   :  { %11 = vsyncpa [#allocation6], 0  ;;  %s28_s20 = sshll.u32 %s398_s1, 4  ;;  %s29_s20 = int_to_ptr.hbm [resolvable:$true] %s28_s20 }
   0x2   :  { %12 = vsyncpa [#allocation4], 0  ;;  %s343_s21 = smov [#allocation5]   ;;  %s18_s25 = sshll.u32 %s397_s0, 4  ;;  %s19_s25 = int_to_ptr.hbm [resolvable:$true] %s18_s25 }
   0x3   :  { %s30_s22 = sshll.u32 %s343_s21, 4  ;;  %s344_s26 = smov 64   ;;  %s31_s22 = int_to_ptr.vmem [resolvable:$true] %s30_s22 }
   0x4   :  { %s345_s27 = smov 4   ;;  %s346_s28 = smov [#allocation2]  }
   0x5   :  { %36 = dma.hbm_to_vmem [thread:$0]  %s29_s20, 256, %s31_s22, [#allocation6], %s344_s26, %s344_s26, %s345_s27  }
   0x6   :  { %s20_s29 = sshll.u32 %s346_s28, 4  ;;  %s43_s7 = sshll.u32 %s400_s3, 4  ;;  %s21_s29 = int_to_ptr.vmem [resolvable:$true] %s20_s29  ;;  %s44_s7 = int_to_ptr.hbm [resolvable:$true] %s43_s7 }
   0x7   :  { %23 = dma.hbm_to_vmem [thread:$0]  %s19_s25, 128, %s21_s29, [#allocation3]  }
   0x8   :  { %s347_s1 = smov [#allocation7]  }
   0x9   :  { %s45_s8 = sshll.u32 %s347_s1, 4  ;;  %s46_s8 = int_to_ptr.vmem [resolvable:$true] %s45_s8 }
   0xa   :  { %51 = dma.hbm_to_vmem [thread:$0]  %s44_s7, 512, %s46_s8, [#allocation6], %s344_s26, %s344_s26, %s345_s27  }
   0xb   :  { %337 = dma.done.wait [#allocation3], 128  }
   0xc   :  { %338 = vsyncadd [#allocation3], 4294967168 }
   0xd   :  { %339 = dma.done.wait [#allocation6], 768  }
   0xe   :  { %340 = vsyncadd [#allocation6], 4294966528  ;;  %v224_v0 = vld [vmem:[#allocation5 + $0x8] sm:$0xff]  ;;  %v223_v2 = vld [vmem:[#allocation5] sm:$0xff]  ;;  %vm89_vm0 = vcmask 261120   ;;  %vm144_vm1 = vcmask 523264   ;;  %v161_v14 = vlaneseq }
   0xf   :  { %v228_v1 = vld [vmem:[#allocation7 + $0x18] sm:$0xff]  ;;  %99 = vmatpush.bf16.msra.mxu0 %v224_v0  ;;  %v67_v3 = vld [vmem:[#allocation2] sm:$0xff]  ;;  %v227_v4 = vld [vmem:[#allocation7 + $0x10] sm:$0xff]  ;;  %vm177_vm3 = vcmask 80896  }
  0x10   :  { %152 = vmatpush.bf16.msra.mxu1 %v228_v1  ;;  %v68_v5 = vpack.c.bf16 %v67_v3, %v67_v3  ;;  %v226_v6 = vld [vmem:[#allocation7 + $0x8] sm:$0xff]  ;;  %v225_v7 = vld [vmem:[#allocation7] sm:$0xff]  ;;  %v162_v15 = vand.u32 127, %v161_v14 }
  0x11   :  { %v235_v8 = vld [vmem:[%s399_s2] ss:$0 sm:$0xff]  ;;  %s348_s2 = smov [#allocation8]  }
  0x12   :  { %v236_v16 = vld [vmem:[%s401_s4] ss:$0 sm:$0xff]  ;;  %vm163_vm2 = vcmp.lt.s32.totalorder %v162_v15, 10  ;;  %s184_s11 = sshll.u32 %s348_s2, 4  ;;  %s186_s4 = sshll.u32 %s402_s5, 4  ;;  %s185_s11 = int_to_ptr.vmem [resolvable:$true] %s184_s11  ;;  %s187_s4 = int_to_ptr.hbm [resolvable:$true] %s186_s4 }
  0x13   :  { %100 = vmatpush.bf16.msra.mxu0 %v223_v2 }
  0x14   :  { %153 = vmatpush.bf16.msra.mxu1 %v227_v4 }
  0x16   :  { %205 = vmatmul.msk.bf16.vlgmr.msra.gmra.mxu0 %vm89_vm0, %v68_v5 }
  0x18   :  { %154 = vmatpush.bf16.msra.mxu1 %v226_v6 }
  0x1c   :  { %155 = vmatpush.bf16.msra.mxu1 %v225_v7 }
  0x93   :  { %v102_v9 = vpop.f32.mrf.mxu0 }
  0x94   :  { %v103_v10 = vadd.f32 %v235_v8, %v102_v9 }
  0x96   :  { %v106_v11 = vmax.f32 %v103_v10, 0.0 }
  0x98   :  { %v107_v12 = vpack.c.bf16 %v106_v11, %v106_v11 }
  0x9a   :  { %222 = vmatmul.msk.bf16.vlgmr.msra.gmra.mxu1 %vm144_vm1, %v107_v12 }
  0x9b   :  { %v104_v13 = vpop.f32.mrf.mxu0 }
 0x117   :  { %v157_v17 = vpop.f32.mrf.mxu1 }
 0x118   :  { %v158_v18 = vadd.f32 %v236_v16, %v157_v17 }
 0x11a   :  { %v166_v19 = vsel %vm163_vm2, %v158_v18, -inf }
 0x11b   :  { %167 = vmax.xlane.f32.xlu0 %v166_v19 }
 0x11f   :  { %v159_v20 = vpop.f32.mrf.mxu1 }
 0x18e   :  { %v168_v21 = vpop.xlane.xlu0 %167 }
 0x18f   :  { %v169_v22 = vsub.f32 %v166_v19, %v168_v21 }
 0x191   :  { %v170_v23 = vmul.f32 1.442695, %v169_v22 }
 0x193   :  { %237 = vpow2.f32 %v170_v23 }
 0x199   :  { %v238_v24 = vpop.eup %237 }
 0x19a   :  { %172 = vadd.xlane.f32.xlu0 %v238_v24 }
 0x20d   :  { %v173_v25 = vpop.xlane.xlu0 %172 }
 0x20e   :  { %239 = vlog2.f32 %v173_v25 }
 0x214   :  { %v240_v26 = vpop.eup %239 }
 0x215   :  { %v175_v27 = vmul.f32 0.6931472, %v240_v26 }
 0x217   :  { %v176_v28 = vsub.f32 %v169_v22, %v175_v27 }
 0x219   :  { %178 = vst.msk [vmem:[#allocation8] sm:$0xff] %vm177_vm3, %v176_v28 }
 0x21a   :  { %189 = dma.vmem_to_hbm [thread:$0]  %s185_s11, 128, %s187_s4, [#allocation4]  }
 0x21b   :  { %341 = dma.done.wait [#allocation4], 128  }
 0x21c   :  { %342 = vsyncadd [#allocation4], 4294967168 }
 0x21d   :  { %194 = vsyncpa [#allocation3], 1 }
 0x21e   :  { %195 = vsyncpa [#allocation6], 1 }
 0x21f   :  { %196 = vsyncpa [#allocation4], 1 }

</bundles_post_ra>
